<compile_context>
chip_gen: v7x
topology: tpu7x:2x2x1
jax: 0.10.0
libtpu: 0.0.40
codegen_flags: <defaults>
</compile_context>

<pallas_src>
import jax
import jax.numpy as jnp
from jax.experimental import pallas as pl
from jax.experimental.pallas import tpu as pltpu


def _round_up(x, m):
    return ((x + m - 1) // m) * m


def _cdiv(a, b):
    return -(-a // b)


def base_kernel(x_ref, w12_ref, b12_ref, w3_ref, b3_ref, o_ref):
    # Layers 1+2 fused: h = relu([view|feat] @ blockdiag(W1^T, W2^T) + [b1|b2])
    h = jnp.dot(x_ref[...], w12_ref[...], preferred_element_type=jnp.float32)
    h = jnp.maximum(h + b12_ref[...], 0.0)                       # [TM, 2H] f32
    # Layer 3: dense = relu(h @ W3^T + b3)  (torch concat is implicit in h).
    d = jnp.dot(h.astype(w3_ref.dtype), w3_ref[...],
                preferred_element_type=jnp.float32)
    o_ref[...] = jnp.maximum(d + b3_ref[...], 0.0).astype(o_ref.dtype)


def prepare_base_params(params, *, compute_dtype=jnp.bfloat16):
    """One-time weight preparation (transpose, block-diag pack, dtype cast).

    params: (w1, b1, w2, b2, w3, b3) in PyTorch nn.Linear layout
            ([out, in] weights, [out] biases).
    """
    w1, b1, w2, b2, w3, b3 = params
    H, V = w1.shape
    Fdim = w2.shape[1]
    A = 2 * H
    assert w3.shape == (A, A)

    # Block-diagonal first-layer weight so [view|feat] @ W12 == [h_view|h_emb].
    w12 = jnp.zeros((V + Fdim, A), jnp.float32)
    w12 = w12.at[:V, :H].set(jnp.transpose(w1))
    w12 = w12.at[V:, H:].set(jnp.transpose(w2))

    return {
        "w12": w12.astype(compute_dtype),                        # (V+F, 2H)
        "b12": jnp.concatenate([b1, b2]).reshape(1, A).astype(jnp.float32),
        "w3t": jnp.transpose(w3).astype(compute_dtype),          # (2H, 2H)
        "b3": b3.reshape(1, A).astype(jnp.float32),
        "V": int(V),
        "F": int(Fdim),
        "A": int(A),
        "compute_dtype": compute_dtype,
    }


def base_forward(input_view, input_feature, prep, *, block_batch=512):
    """Forward of MFAC `Base`.

    input_view:    [B, *view_space]
    input_feature: [B, feature_space[0]]
    prep:          output of prepare_base_params (cached across calls).
    Returns [B, 2*hidden] f32.
    """
    B = input_view.shape[0]
    V, Fdim, A = prep["V"], prep["F"], prep["A"]
    K_in = V + Fdim
    cdt = prep["compute_dtype"]
    act_bytes = jnp.dtype(cdt).itemsize
    sublane_align = 16 if act_bytes == 2 else 8

    # Concat fused with the compute-dtype cast: same HBM write bytes as
    # casting the two inputs separately, but gives one input stream / one dot.
    view_flat = input_view.reshape(B, V)
    x = jnp.concatenate(
        [view_flat.astype(cdt), input_feature.astype(cdt)], axis=1)  # [B, V+F]

    # --- Generation-aware tile size & VMEM budget ---------------------------
    vmem_cap = 64 * 1024 * 1024            # conservative default (v7x per-TC)
    try:
        info = pltpu.get_tpu_info()
        vmem_cap = int(getattr(info, "vmem_capacity_bytes", vmem_cap))
    except Exception:
        pass
    budget = (3 * vmem_cap) // 4

    w_bytes = (K_in * A + A * A) * act_bytes + 2 * A * 4

    def tile_bytes(tm):
        # double-buffered input/output tiles + (worst-case double-buffered)
        # resident weights/biases + misc slack.
        return (2 * tm * K_in * act_bytes + 2 * tm * A * 4
                + 2 * w_bytes + (1 << 20))

    # Aim for >= 2 grid steps (v7x megacore) and cap the tile at 512 rows.
    TM = max(sublane_align,
             _round_up(min(block_batch, 512, _cdiv(B, 2)), sublane_align))
    while TM > sublane_align and tile_bytes(TM) > budget:
        TM = max(sublane_align, _round_up(TM // 2, sublane_align))

    Bp = _round_up(B, TM)
    if Bp != B:
        x = jnp.pad(x, ((0, Bp - B), (0, 0)))
    grid = (Bp // TM,)

    vmem_limit = int(min(budget, max(tile_bytes(TM) * 2, 32 * 1024 * 1024)))

    flops = 2 * Bp * (K_in * A + A * A)
    bytes_accessed = Bp * K_in * act_bytes + w_bytes + Bp * A * 4

    out = pl.pallas_call(
        base_kernel,
        out_shape=jax.ShapeDtypeStruct((Bp, A), jnp.float32),
        grid_spec=pltpu.PrefetchScalarGridSpec(
            num_scalar_prefetch=0,
            grid=grid,
            in_specs=[
                pl.BlockSpec((TM, K_in), lambda i: (i, 0)),   # [view|feat] tile
                pl.BlockSpec((K_in, A), lambda i: (0, 0)),    # block-diag W12
                pl.BlockSpec((1, A), lambda i: (0, 0)),       # [b1|b2]
                pl.BlockSpec((A, A), lambda i: (0, 0)),       # W3^T
                pl.BlockSpec((1, A), lambda i: (0, 0)),       # b3
            ],
            out_specs=pl.BlockSpec((TM, A), lambda i: (i, 0)),
        ),
        compiler_params=pltpu.CompilerParams(
            dimension_semantics=("parallel",),
            vmem_limit_bytes=vmem_limit),
        cost_estimate=pl.CostEstimate(
            flops=flops, transcendentals=0, bytes_accessed=bytes_accessed),
    )(x, prep["w12"], prep["b12"], prep["w3t"], prep["b3"])

    return out if Bp == B else out[:B]


def reference_forward(input_view, input_feature, params):
    w1, b1, w2, b2, w3, b3 = params
    B = input_view.shape[0]
    fv = input_view.reshape(B, -1)
    h_view = jax.nn.relu(fv @ w1.T + b1)
    h_emb = jax.nn.relu(input_feature @ w2.T + b2)
    dense = jnp.concatenate([h_view, h_emb], axis=1)
    return jax.nn.relu(dense @ w3.T + b3)


if __name__ == "__main__":
    # Small shapes consistent with Base(view_space, feature_space, num_actions, hidden):
    view_space = (4, 4, 5)       # prod = 80
    feature_space = (16,)
    hidden_size = 32
    batch = 24                   # not a multiple of the 16-row tile -> exercises
                                 # batch padding AND gives a 2-step parallel grid

    V = 1
    for s in view_space:
        V *= s
    Fdim = feature_space[0]

    key = jax.random.PRNGKey(0)
    keys = jax.random.split(key, 8)

    def linear_init(kw, kb, fan_in, fan_out):
        # PyTorch nn.Linear default: U(-1/sqrt(fan_in), 1/sqrt(fan_in))
        bound = 1.0 / float(jnp.sqrt(jnp.float32(fan_in)))
        w = jax.random.uniform(kw, (fan_out, fan_in), jnp.float32,
                               minval=-bound, maxval=bound)
        b = jax.random.uniform(kb, (fan_out,), jnp.float32,
                               minval=-bound, maxval=bound)
        return w, b

    w1, b1 = linear_init(keys[0], keys[1], V, hidden_size)
    w2, b2 = linear_init(keys[2], keys[3], Fdim, hidden_size)
    w3, b3 = linear_init(keys[4], keys[5], hidden_size * 2, hidden_size * 2)
    params = (w1, b1, w2, b2, w3, b3)

    input_view = jax.random.normal(keys[6], (batch,) + view_space, jnp.float32)
    input_feature = jax.random.normal(keys[7], (batch, Fdim), jnp.float32)

    prep = prepare_base_params(params)   # one-time weight prep, cached
    prep = jax.tree_util.tree_map(
        lambda v: jax.block_until_ready(v) if isinstance(v, jax.Array) else v, prep)

    out = base_forward(input_view, input_feature, prep)
    out = jax.block_until_ready(out)

    ref = reference_forward(input_view, input_feature, params)
    assert out.shape == (batch, hidden_size * 2), out.shape
    max_err = float(jnp.max(jnp.abs(out - ref)))
    # bf16 matmul operands (f32 accumulation) vs f32 reference -> loose tolerance.
    assert jnp.allclose(out, ref, atol=5e-2, rtol=5e-2), \
        f"mismatch vs reference, max abs err {max_err}"
    assert jnp.all(out >= 0.0)  # post-ReLU

    print("KERNEL_OK")
</pallas_src>

<mosaic_0001>
module attributes {stable_mosaic.version = 11 : i64} {
  func.func @base_kernel(%arg0: i32, %arg1: memref<16x96xbf16, #tpu.memory_space<vmem>>, %arg2: memref<96x64xbf16, #tpu.memory_space<vmem>>, %arg3: memref<1x64xf32, #tpu.memory_space<vmem>>, %arg4: memref<64x64xbf16, #tpu.memory_space<vmem>>, %arg5: memref<1x64xf32, #tpu.memory_space<vmem>>, %arg6: memref<16x64xf32, #tpu.memory_space<vmem>>) attributes {dimension_semantics = [#tpu.dimension_semantics<parallel>], iteration_bounds = array<i64: 2>, scalar_prefetch = 0 : i64, scratch_operands = 0 : i64, tpu.core_type = #tpu.core_type<tc>, window_params = [{transform_indices = @transform_0, window_bounds = array<i64: 16, 96>}, {pipeline_mode = #tpu.pipeline_mode<synchronous>, transform_indices = @transform_1, window_bounds = array<i64: 96, 64>}, {pipeline_mode = #tpu.pipeline_mode<synchronous>, transform_indices = @transform_2, window_bounds = array<i64: 1, 64>}, {pipeline_mode = #tpu.pipeline_mode<synchronous>, transform_indices = @transform_3, window_bounds = array<i64: 64, 64>}, {pipeline_mode = #tpu.pipeline_mode<synchronous>, transform_indices = @transform_4, window_bounds = array<i64: 1, 64>}, {transform_indices = @transform_5, window_bounds = array<i64: 16, 64>}]} {
    %c0 = arith.constant 0 : index
    %c0_0 = arith.constant 0 : index
    %0 = vector.load %arg1[%c0, %c0_0] : memref<16x96xbf16, #tpu.memory_space<vmem>>, vector<16x96xbf16>
    %c0_1 = arith.constant 0 : index
    %c0_2 = arith.constant 0 : index
    %1 = vector.load %arg2[%c0_1, %c0_2] : memref<96x64xbf16, #tpu.memory_space<vmem>>, vector<96x64xbf16>
    %cst = arith.constant dense<0.000000e+00> : vector<16x64xf32>
    %2 = tpu.matmul %0, %1, %cst {dimension_numbers = #tpu.dot_dimension_numbers<[1], [0], [0], [1], [0, 0, 1, 1], [], []>} : vector<16x96xbf16>, vector<96x64xbf16>, vector<16x64xf32> -> vector<16x64xf32>
    %c0_3 = arith.constant 0 : index
    %c0_4 = arith.constant 0 : index
    %3 = vector.load %arg3[%c0_3, %c0_4] : memref<1x64xf32, #tpu.memory_space<vmem>>, vector<1x64xf32>
    %4 = vector.broadcast %3 : vector<1x64xf32> to vector<16x64xf32>
    %5 = arith.addf %2, %4 : vector<16x64xf32>
    %cst_5 = arith.constant 0.000000e+00 : f32
    %6 = vector.broadcast %cst_5 : f32 to vector<16x64xf32>
    %7 = arith.maximumf %5, %6 : vector<16x64xf32>
    %8 = arith.truncf %7 : vector<16x64xf32> to vector<16x64xbf16>
    %c0_6 = arith.constant 0 : index
    %c0_7 = arith.constant 0 : index
    %9 = vector.load %arg4[%c0_6, %c0_7] : memref<64x64xbf16, #tpu.memory_space<vmem>>, vector<64x64xbf16>
    %cst_8 = arith.constant dense<0.000000e+00> : vector<16x64xf32>
    %10 = tpu.matmul %8, %9, %cst_8 {dimension_numbers = #tpu.dot_dimension_numbers<[1], [0], [0], [1], [0, 0, 1, 1], [], []>} : vector<16x64xbf16>, vector<64x64xbf16>, vector<16x64xf32> -> vector<16x64xf32>
    %c0_9 = arith.constant 0 : index
    %c0_10 = arith.constant 0 : index
    %11 = vector.load %arg5[%c0_9, %c0_10] : memref<1x64xf32, #tpu.memory_space<vmem>>, vector<1x64xf32>
    %12 = vector.broadcast %11 : vector<1x64xf32> to vector<16x64xf32>
    %13 = arith.addf %10, %12 : vector<16x64xf32>
    %cst_11 = arith.constant 0.000000e+00 : f32
    %14 = vector.broadcast %cst_11 : f32 to vector<16x64xf32>
    %15 = arith.maximumf %13, %14 : vector<16x64xf32>
    %c0_12 = arith.constant 0 : index
    %c0_13 = arith.constant 0 : index
    %16 = vector.load %arg6[%c0_12, %c0_13] : memref<16x64xf32, #tpu.memory_space<vmem>>, vector<16x64xf32>
    tpu.vector_store %arg6[%c0_12, %c0_13], %15 {strides = array<i32>} : memref<16x64xf32, #tpu.memory_space<vmem>>, vector<16x64xf32>,
    return
  }
  func.func @transform_0(%arg0: i32) -> (i32, i32) {
    %c0_i32 = arith.constant 0 : i32
    %c0_i32_0 = arith.constant 0 : i32
    return %arg0, %c0_i32 : i32, i32
  }
  func.func @transform_1(%arg0: i32) -> (i32, i32) {
    %c0_i32 = arith.constant 0 : i32
    %c0_i32_0 = arith.constant 0 : i32
    %c0_i32_1 = arith.constant 0 : i32
    return %c0_i32, %c0_i32_0 : i32, i32
  }
  func.func @transform_2(%arg0: i32) -> (i32, i32) {
    %c0_i32 = arith.constant 0 : i32
    %c0_i32_0 = arith.constant 0 : i32
    %c0_i32_1 = arith.constant 0 : i32
    return %c0_i32, %c0_i32_0 : i32, i32
  }
  func.func @transform_3(%arg0: i32) -> (i32, i32) {
    %c0_i32 = arith.constant 0 : i32
    %c0_i32_0 = arith.constant 0 : i32
    %c0_i32_1 = arith.constant 0 : i32
    return %c0_i32, %c0_i32_0 : i32, i32
  }
  func.func @transform_4(%arg0: i32) -> (i32, i32) {
    %c0_i32 = arith.constant 0 : i32
    %c0_i32_0 = arith.constant 0 : i32
    %c0_i32_1 = arith.constant 0 : i32
    return %c0_i32, %c0_i32_0 : i32, i32
  }
  func.func @transform_5(%arg0: i32) -> (i32, i32) {
    %c0_i32 = arith.constant 0 : i32
    %c0_i32_0 = arith.constant 0 : i32
    return %arg0, %c0_i32 : i32, i32
  }
}

</mosaic_0001>

<bundles_post_ra>
// kernel: tpu_custom_call.1
= control target key start
LH: loop header
LB: loop body
LE: loop exit
PB: predicated region body
PF: predicated region fallthrough
CT: control target
= control target key end

     0   :  { %10 = vsyncpa [#allocation3], 0  ;;  %s863_s0 = inlined_call_operand.vmem [shape: bf16[32,96], index: 0, kind: input, shape index: {}]   ;;  %s864_s1 = inlined_call_operand.vmem [shape: bf16[96,64], index: 1, kind: input, shape index: {}]   ;;  %s865_s2 = inlined_call_operand.vmem [shape: f32[1,64], index: 2, kind: input, shape index: {}]   ;;  %s866_s3 = inlined_call_operand.vmem [shape: bf16[64,64], index: 3, kind: input, shape index: {}]   ;;  %s867_s4 = inlined_call_operand.vmem [shape: f32[1,64], index: 4, kind: input, shape index: {}]   ;;  %s868_s5 = inlined_call_operand.hbm [shape: f32[32,64], index: 5, kind: output, shape index: {}]  }
   0x1   :  { %12 = vsyncpa [#allocation3 + $0x1], 0  ;;  %s722_s18 = smov 0   ;;  %s724_s19 = smov 0  }
   0x2   :  { %s726_s20 = smov 0   ;;  %s728_s21 = smov 0  }
   0x3 LB: > { %s743_s22 = sadd.s32 4294967295, %s685_s21   ;;  %s501_s23 = sadd.s32 4294967294, %s685_s21   ;;  %s685_s21 = sphi %s728_s21, %s874_s21   ;;  %s681_s20 = sphi %s726_s20, %s873_s20   ;;  %s677_s19 = sphi %s724_s19, %s872_s19   ;;  %s673_s18 = sphi %s722_s18, %s871_s18  }
   0x4   : > { %s747_s24 = sadd.s32 1, %s685_s21   ;;  %s135_s25 = sadd.s32 1, %s681_s20 }
   0x5   : > { %s132_s26 = ssub.s32 %s685_s21, %s747_s24  ;;  %p145_p0 = scmp.ne.s32.totalorder %s681_s20, %s677_s19 }
   0x6   : > { %p133_p1 = scmp.eq.s32.totalorder %s132_s26, 0  ;;  %p146_p2 = scmp.eq.s32.totalorder %s743_s22, 1 }
   0x7   : > { %p151_p3 = scmp.ne.s32.totalorder %s677_s19, %s673_s18  ;;  %p152_p4 = scmp.eq.s32.totalorder %s501_s23, 1 }
   0x8   : > { %s758_s27 = scalar_select %p133_p1, %s681_s20, %s135_s25  }
   0x9   : > { %p760_p5 = por %p146_p2, %p145_p0  ;;  %p764_p6 = por %p152_p4, %p151_p3 }
   0xa   : > { %p504_p7 = scmp.ge.s32.totalorder %s685_s21, 1  ;;  %p191_p8 = scmp.lt.s32.totalorder %s685_s21, 3 }
   0xc   : > { %p192_p9 = pnand %p504_p7, %p191_p8 }
   0xd   : > { %v612_v0 = vld [vmem:[%s864_s1] sm:$0xff] (!%p192_p9)   ;;  %v687_v1 = vmov (!%p192_p9), 0.0   ;;  %v613_v2 = vld [vmem:[%s864_s1 + $0x8] sm:$0xff] (!%p192_p9)   ;;  %vm688_vm0 = vmmov (!%p192_p9), 0   ;;  %s506_s9 = sshll.u32 (!%p192_p9), %s743_s22, 1  ;;  %v614_v3 = vld [vmem:[%s864_s1 + $0x10] sm:$0xff] (!%p192_p9)  }
   0xe   : > { %195 = sbr.rel (%p192_p9) target bundleno = 491 (0x1eb), region = 40  ;;  %541 = vmatprep.subr.bf16.mxu0 (!%p192_p9), %v687_v1  ;;  %557 = vmatprep.subr.bf16.mxu1 (!%p192_p9), %v687_v1  ;;  %p220_p10 = scmp.lt.s32.totalorder (!%p192_p9), %s506_s9, 3  ;;  %v619_v4 = vld [vmem:[%s866_s3] sm:$0xff] (!%p192_p9)   ;;  %v620_v5 = vld [vmem:[%s866_s3 + $0x8] sm:$0xff] (!%p192_p9)   ;;  %v615_v6 = vld [vmem:[%s864_s1 + $0x18] sm:$0xff] (!%p192_p9)   ;;  %vm289_vm1 = vcmask (!%p192_p9), 785408  }
   0xf   : > { %542 = vmatpush3.bf16.msra.mxu0 (!%p192_p9), %v612_v0  ;;  %553 = vmatprep.mubr.msk.bf16.mxu0 (!%p192_p9), %vm688_vm0, %v687_v1  ;;  %v616_v7 = vld [vmem:[%s864_s1 + $0x20] sm:$0xff] (!%p192_p9)   ;;  %v617_v8 = vld [vmem:[%s864_s1 + $0x28] sm:$0xff] (!%p192_p9)   ;;  %v621_v10 = vld [vmem:[%s866_s3 + $0x10] sm:$0xff] (!%p192_p9)   ;;  %vm376_vm2 = vcmask (!%p192_p9), 523264   ;;  %s216_s16 = sand.u32 (!%p192_p9), 1, %s677_s19   ;;  %s528_s6 = sshll.u32 (!%p192_p9), %s743_s22, 8 }
  0x10   : > { %543 = vmatprep.subr.bf16.mxu0 (!%p192_p9), %v687_v1  ;;  %565 = vmatprep.mubr.msk.bf16.mxu1 (!%p192_p9), %vm688_vm0, %v687_v1  ;;  %v622_v11 = vld [vmem:[%s866_s3 + $0x18] sm:$0xff] (!%p192_p9)   ;;  %v508_v12 = vld [vmem:[%s865_s2] ss:$0 sm:$0xff] (!%p192_p9)  ;;  %s822_s22 = scalar_lea.sflag (!%p192_p9), [#allocation3], %s216_s16  ;;  %s689_s11 = smov (!%p192_p9), [#allocation2]  }
  0x11   : > { %558 = vmatpush3.bf16.msra.mxu1 (!%p192_p9), %v619_v4  ;;  %v517_v22 = vld [vmem:[%s867_s4] ss:$0 sm:$0xff] (!%p192_p9)  ;;  %s627_s12 = sshll.u32 (!%p192_p9), %s689_s11, 4  ;;  %s628_s12 = int_to_ptr.vmem [resolvable:$false] %s627_s12 }
  0x12   : > { %559 = vmatprep.subr.bf16.mxu1 (!%p192_p9), %v687_v1  ;;  %s629_s13 = scalar_lea.vmem (!%p192_p9), %s628_s12, 512 }
  0x13   : > { %544 = vmatpush3.bf16.msra.mxu0 (!%p192_p9), %v613_v2 }
  0x14   : > { %545 = vmatprep.subr.bf16.mxu0 (!%p192_p9), %v687_v1 }
  0x15   : > { %s876_s9 = smov (!%p220_p10, %s506_s9), 3  ;;  %560 = vmatpush3.bf16.msra.mxu1 %v620_v5 }
  0x16   : > { %s507_s14 = sshll.u32 %s876_s9, 2  ;;  %561 = vmatprep.subr.bf16.mxu1 %v687_v1  ;;  %s818_s9 = scalar_lea.hbm %s868_s5, %s528_s6 }
  0x17   : > { %s223_s17 = scalar_lea.vmem %s863_s0, %s507_s14  ;;  %546 = vmatpush3.bf16.msra.mxu0 %v614_v3 }
  0x18   : > { %547 = vmatprep.subr.bf16.mxu0 %v687_v1  ;;  %v618_v9 = vld [vmem:[%s223_s17] sm:$0xff]   ;;  %s505_s17 = sshll.u32 %s216_s16, 4 }
  0x19   : > { %562 = vmatpush3.bf16.msra.mxu1 %v621_v10  ;;  %s218_s26 = scalar_lea.vmem [#allocation2], %s505_s17 }
  0x1a   : > { %563 = vmatprep.subr.bf16.mxu1 %v687_v1  ;;  %s439_s30 = sshll.u32 %s218_s26, 4  ;;  %s813_s30 = int_to_ptr.vmem [resolvable:$true] %s439_s30 }
  0x1b   : > { %548 = vmatpush3.bf16.msra.mxu0 %v615_v6  ;;  %s623_s10 = scalar_lea.vmem %s813_s30, 256  ;;  %p630_p0 = scmp.lt.s32.totalorder %s813_s30, %s628_s12 }
  0x1c   : > { %549 = vmatprep.subr.bf16.mxu0 %v687_v1  ;;  %p624_p11 = scmp.ne.s32.totalorder %s813_s30, %s623_s10  ;;  %p631_p1 = scmp.lt.s32.totalorder %s629_s13, %s623_s10 }
  0x1d   : > { %564 = vmatpush3.bf16.msra.mxu1 %v622_v11 }
  0x1e   : > { %p625_p12 = pnand %p624_p11, %p760_p5  ;;  %p632_p2 = por %p631_p1, %p630_p0 }
  0x1f   : > { %550 = vmatpush3.bf16.msra.mxu0 %v616_v7 }
  0x20   : > { %551 = vmatprep.subr.bf16.mxu0 %v687_v1  ;;  %p626_p13 = pneg %p625_p12 }
  0x22   : > { %p633_p3 = pnand %p632_p2, %p626_p13 }
  0x23   : > { %552 = vmatpush3.bf16.msra.mxu0 %v617_v8 }
  0x26   : > { %554 = vmatmul.mubr.msk.bf16.vlgmr.msra.gmra.mrb[0].mxu0 %vm289_vm1, %v618_v9 }
  0xf9   : > { %v327_v13 = vpop.f32.mrb[0].mxu0 }
  0xfa   : > { %v328_v14 = vadd.f32 %v508_v12, %v327_v13  ;;  %v555_v15 = vpop.f32.mrb[1].mxu0 }
  0xfb   : > { %v330_v16 = vpop.f32.mrb[2].mxu0 }
  0xfc   : > { %v331_v17 = vadd.f32 %v508_v12, %v330_v16  ;;  %v556_v18 = vpop.f32.mrb[3].mxu0  ;;  %v334_v19 = vmax.f32 %v328_v14, 0.0 }
  0xfe   : > { %v335_v20 = vmax.f32 %v331_v17, 0.0 }
 0x100   : > { %v336_v21 = vpack.c.bf16 %v335_v20, %v334_v19 }
 0x102   : > { %566 = vmatmul.mubr.msk.bf16.vlgmr.msra.gmra.mrb[0].mxu1 %vm376_vm2, %v336_v21 }
 0x1d5   : > { %v414_v23 = vpop.f32.mrb[0].mxu1 }
 0x1d6   : > { %v415_v24 = vadd.f32 %v517_v22, %v414_v23  ;;  %v567_v25 = vpop.f32.mrb[1].mxu1 }
 0x1d7   : > { %v417_v26 = vpop.f32.mrb[2].mxu1 }
 0x1d8   : > { %v421_v27 = vmax.f32 %v415_v24, 0.0  ;;  %v418_v28 = vadd.f32 %v517_v22, %v417_v26  ;;  %v568_v29 = vpop.f32.mrb[3].mxu1 }
 0x1da   : > { %423 = vst.msk [vmem:[%s218_s26] sm:$0xff] %vm376_vm2, %v421_v27  ;;  %v422_v30 = vmax.f32 %v418_v28, 0.0 }
 0x1dc   : > { %424 = vst.msk [vmem:[%s218_s26 + $0x8] sm:$0xff] %vm376_vm2, %v422_v30 }
 0x1dd   : > { %636 = shalt.err (!%p633_p3)
}
 0x1de   : > { %s637_s14 = scalar_lea.hbm %s818_s9, 256  ;;  %s641_s17 = scalar_lea.hbm %s868_s5, 512 }
 0x1df   : > { %p638_p4 = scmp.ne.s32.totalorder %s818_s9, %s637_s14  ;;  %p642_p9 = scmp.lt.u32.totalorder %s818_s9, %s868_s5 }
 0x1e0   : > { %p643_p10 = scmp.lt.u32.totalorder %s641_s17, %s637_s14  ;;  %p645_p12 = scmp.lt.u32.totalorder %s637_s14, %s818_s9 }
 0x1e1   : > { %p639_p7 = pnand %p638_p4, %p760_p5 }
 0x1e2   : > { %p644_p11 = por %p643_p10, %p642_p9 }
 0x1e3   : > { %p640_p8 = pneg %p639_p7 }
 0x1e4   : > { %p646_p13 = por %p645_p12, %p644_p11 }
 0x1e6   : > { %p647_p0 = pnand %p646_p13, %p640_p8 }
 0x1e8   : > { %650 = shalt.err (!%p647_p0)
}
 0x1e9   : > { %s690_s26 = smov 128   ;;  %s691_s6 = smov 8  }
 0x1ea   : > { %569 = dma.vmem_to_hbm [thread:$0]  (%p760_p5), %s813_s30, 256, %s818_s9, %s822_s22, %s690_s26, %s690_s26, %s691_s6  }
 0x1eb PF: > { %p575_p1 = scmp.ge.s32.totalorder %s685_s21, 2  ;;  %s454_s7 = sand.u32 1, %s673_s18  }
 0x1ec   : > { %s455_s8 = scalar_lea.sflag [#allocation3], %s454_s7 }
 0x1ed   : > { %p572_p2 = pnand %p575_p1, %p764_p6 }
 0x1ef   : > { %668 = dma.done.wait (!%p572_p2), %s455_s8, 256  }
 0x1f0   : > { %670 = vsyncadd (!%p572_p2), %s455_s8, 4294967040  ;;  %p15_p3 = scmp.ge.s32.totalorder %s747_s24, 4   ;;  %s871_s18 = smov %s677_s19 }
 0x1f1   : > { %s872_s19 = smov %s681_s20  ;;  %s873_s20 = smov %s758_s27 }
 0x1f2   : > { %s874_s21 = smov %s747_s24  ;;  %17 = sbr.rel (!%p15_p3) target bundleno = 3 (0x3), region = 75 }
 0x1f9   :  { %460 = vsyncpa [#allocation3], 1 }
 0x1fa   :  { %462 = vsyncpa [#allocation3 + $0x1], 1 }

</bundles_post_ra>
